<compile_context>
chip_gen: v7x
topology: tpu7x:2x2x1
jax: 0.10.0
libtpu: 0.0.40
codegen_flags: <defaults>
</compile_context>

<pallas_src>
import functools

import jax
import jax.numpy as jnp
from jax.experimental import pallas as pl
from jax.experimental.pallas import tpu as pltpu

EPS = 1e-5  # nn.BatchNorm1d default eps


def ffn_kernel(x_ref, w_ref, gamma_ref, beta_ref, o_ref, acc_ref):
    """grid = (j: Out tiles [parallel], k: In/K tiles [arbitrary, reduction])."""
    k = pl.program_id(1)

    @pl.when(k == 0)
    def _init():
        acc_ref[...] = jnp.zeros_like(acc_ref)

    # MXU matmul on bf16 operands, f32 accumulation.
    acc_ref[...] += jnp.dot(
        x_ref[...], w_ref[...], preferred_element_type=jnp.float32
    )

    @pl.when(k == pl.num_programs(1) - 1)
    def _finalize():
        y = acc_ref[...]                                         # (B, tn) f32
        mean = jnp.mean(y, axis=0, keepdims=True)                # (1, tn)
        diff = y - mean
        var = jnp.mean(diff * diff, axis=0, keepdims=True)       # biased var
        scale = gamma_ref[...] * jax.lax.rsqrt(var + EPS)        # folded scale
        o_ref[...] = (diff * scale + beta_ref[...]).astype(o_ref.dtype)


def _round_up(x, m):
    return (x + m - 1) // m * m


def _pick_tile(dim_padded):
    # dim_padded is a multiple of 128; prefer the largest tile that divides it.
    for t in (512, 256, 128):
        if dim_padded % t == 0:
            return t
    return 128


@functools.partial(jax.jit, static_argnames=("dropout_rate",))
def feed_forward_layer(x, w, b, gamma, beta, dropout_rate=0.1):
    """x: (B, In) f32; w: (In, Out); b/gamma/beta: (Out,). Returns (B, Out) f32."""
    del dropout_rate  # Dropout is identity in eval mode.
    B, In = x.shape
    Out = w.shape[1]

    In_p = _round_up(In, 128)
    Out_p = _round_up(Out, 128)
    tk = _pick_tile(In_p)
    tn = _pick_tile(Out_p)
    nj = Out_p // tn
    nk = In_p // tk

    # Zero-pad to lane-dense shapes; padded K rows/cols contribute 0 to the
    # matmul and padded Out columns are sliced off below.  bf16 operands for
    # the MXU (halves x/w DMA bytes).
    x_p = jnp.pad(x, ((0, 0), (0, In_p - In))).astype(jnp.bfloat16)
    w_p = jnp.pad(w, ((0, In_p - In), (0, Out_p - Out))).astype(jnp.bfloat16)
    g_p = jnp.pad(gamma, (0, Out_p - Out)).reshape(1, Out_p).astype(jnp.float32)
    be_p = jnp.pad(beta, (0, Out_p - Out)).reshape(1, Out_p).astype(jnp.float32)
    # The linear bias `b` is exactly cancelled by training-mode BatchNorm's
    # mean subtraction, so it is not passed to the kernel (saves a DMA + add).
    del b

    # VMEM budget: double-buffered input/output tiles + f32 accumulator + slack.
    dbuf = 2 * (B * tk * 2 + tk * tn * 2 + 2 * tn * 4 + B * tn * 4)
    vmem_est = dbuf + B * tn * 4 + (2 << 20)
    vmem_limit = int(max(32 << 20, min(vmem_est, 48 << 20)))  # stay under v7x 64 MiB

    cost = pl.CostEstimate(
        flops=2 * B * In_p * Out_p,
        transcendentals=Out_p,
        bytes_accessed=2 * (B * In_p + In_p * Out_p) + 4 * (2 * Out_p + B * Out_p),
    )

    out_p = pl.pallas_call(
        ffn_kernel,
        out_shape=jax.ShapeDtypeStruct((B, Out_p), jnp.float32),
        grid_spec=pltpu.PrefetchScalarGridSpec(
            num_scalar_prefetch=0,
            grid=(nj, nk),
            in_specs=[
                pl.BlockSpec((B, tk), lambda j, k: (0, k)),   # x: full batch, K tile
                pl.BlockSpec((tk, tn), lambda j, k: (k, j)),  # w
                pl.BlockSpec((1, tn), lambda j, k: (0, j)),   # gamma
                pl.BlockSpec((1, tn), lambda j, k: (0, j)),   # beta
            ],
            out_specs=pl.BlockSpec((B, tn), lambda j, k: (0, j)),
            scratch_shapes=[pltpu.VMEM((B, tn), jnp.float32)],
        ),
        compiler_params=pltpu.CompilerParams(
            dimension_semantics=("parallel", "arbitrary"),
            vmem_limit_bytes=vmem_limit,
        ),
        cost_estimate=cost,
    )(x_p, w_p, g_p, be_p)

    return out_p[:, :Out]


def reference_pytorch_f32(x, w, b, gamma, beta):
    """PyTorch-semantics reference: f32 Linear(+bias) -> training-mode BN -> (identity dropout)."""
    y = x @ w + b
    mean = jnp.mean(y, axis=0, keepdims=True)
    var = jnp.mean((y - mean) ** 2, axis=0, keepdims=True)
    return (y - mean) / jnp.sqrt(var + EPS) * gamma + beta


def reference_bf16(x, w, gamma, beta):
    """Reference with the same bf16-matmul / no-bias numerics as the kernel."""
    y = jnp.dot(x.astype(jnp.bfloat16), w.astype(jnp.bfloat16),
                preferred_element_type=jnp.float32)
    mean = jnp.mean(y, axis=0, keepdims=True)
    var = jnp.mean((y - mean) ** 2, axis=0, keepdims=True)
    return (y - mean) * (gamma * jax.lax.rsqrt(var + EPS)) + beta


if __name__ == "__main__":
    key = jax.random.PRNGKey(0)
    k_x, k_w, k_b, k_g, k_be = jax.random.split(key, 5)

    batch, input_dim, output_dim = 16, 48, 40  # small; exercises pad+slice

    x = jax.random.normal(k_x, (batch, input_dim), dtype=jnp.float32)

    bound = 1.0 / (input_dim ** 0.5)
    w = jax.random.uniform(k_w, (input_dim, output_dim), jnp.float32, -bound, bound)
    b = jax.random.uniform(k_b, (output_dim,), jnp.float32, -bound, bound)
    gamma = jnp.ones((output_dim,), jnp.float32) + 0.01 * jax.random.normal(k_g, (output_dim,))
    beta = 0.01 * jax.random.normal(k_be, (output_dim,), dtype=jnp.float32)

    out = feed_forward_layer(x, w, b, gamma, beta)
    out = jax.block_until_ready(out)
    assert out.shape == (batch, output_dim)

    # Tight check vs a reference with matching bf16-matmul numerics.
    ref_bf16 = reference_bf16(x, w, gamma, beta)
    assert jnp.allclose(out, ref_bf16, atol=1e-4, rtol=1e-4), "mismatch vs bf16 reference"

    # Fidelity check vs the PyTorch f32 forward (bias included; cancelled by BN).
    ref_f32 = reference_pytorch_f32(x, w, b, gamma, beta)
    assert jnp.allclose(out, ref_f32, atol=3e-2, rtol=3e-2), "mismatch vs f32 PyTorch reference"

    print("KERNEL_OK")
</pallas_src>

<mosaic_0001>
module attributes {stable_mosaic.version = 11 : i64} {
  func.func @ffn_kernel(%arg0: i32, %arg1: i32, %arg2: memref<16x128xbf16, #tpu.memory_space<vmem>>, %arg3: memref<128x128xbf16, #tpu.memory_space<vmem>>, %arg4: memref<1x128xf32, #tpu.memory_space<vmem>>, %arg5: memref<1x128xf32, #tpu.memory_space<vmem>>, %arg6: memref<16x128xf32, #tpu.memory_space<vmem>>, %arg7: memref<16x128xf32, #tpu.memory_space<vmem>>) attributes {dimension_semantics = [#tpu.dimension_semantics<parallel>, #tpu.dimension_semantics<arbitrary>], iteration_bounds = array<i64: 1, 1>, scalar_prefetch = 0 : i64, scratch_operands = 1 : i64, tpu.core_type = #tpu.core_type<tc>, window_params = [{transform_indices = @transform_0, window_bounds = array<i64: 16, 128>}, {transform_indices = @transform_1, window_bounds = array<i64: 128, 128>}, {transform_indices = @transform_2, window_bounds = array<i64: 1, 128>}, {transform_indices = @transform_3, window_bounds = array<i64: 1, 128>}, {transform_indices = @transform_4, window_bounds = array<i64: 16, 128>}]} {
    %c0_i32 = arith.constant 0 : i32
    %0 = arith.cmpi eq, %arg1, %c0_i32 : i32
    %1 = arith.extui %0 : i1 to i32
    %c0_i32_0 = arith.constant 0 : i32
    %2 = arith.cmpi ne, %1, %c0_i32_0 : i32
    scf.if %2 {
      %cst_10 = arith.constant 0.000000e+00 : f32
      %12 = vector.broadcast %cst_10 : f32 to vector<16x128xf32>
      %c0_11 = arith.constant 0 : index
      %c0_12 = arith.constant 0 : index
      %13 = vector.load %arg7[%c0_11, %c0_12] : memref<16x128xf32, #tpu.memory_space<vmem>>, vector<16x128xf32>
      tpu.vector_store %arg7[%c0_11, %c0_12], %12 {strides = array<i32>} : memref<16x128xf32, #tpu.memory_space<vmem>>, vector<16x128xf32>,
    } else {
    }
    %c0 = arith.constant 0 : index
    %c0_1 = arith.constant 0 : index
    %3 = vector.load %arg7[%c0, %c0_1] : memref<16x128xf32, #tpu.memory_space<vmem>>, vector<16x128xf32>
    %c0_2 = arith.constant 0 : index
    %c0_3 = arith.constant 0 : index
    %4 = vector.load %arg2[%c0_2, %c0_3] : memref<16x128xbf16, #tpu.memory_space<vmem>>, vector<16x128xbf16>
    %c0_4 = arith.constant 0 : index
    %c0_5 = arith.constant 0 : index
    %5 = vector.load %arg3[%c0_4, %c0_5] : memref<128x128xbf16, #tpu.memory_space<vmem>>, vector<128x128xbf16>
    %cst = arith.constant dense<0.000000e+00> : vector<16x128xf32>
    %6 = tpu.matmul %4, %5, %cst {dimension_numbers = #tpu.dot_dimension_numbers<[1], [0], [0], [1], [0, 0, 1, 1], [], []>} : vector<16x128xbf16>, vector<128x128xbf16>, vector<16x128xf32> -> vector<16x128xf32>
    %7 = arith.addf %3, %6 : vector<16x128xf32>
    %c0_6 = arith.constant 0 : index
    %c0_7 = arith.constant 0 : index
    %8 = vector.load %arg7[%c0_6, %c0_7] : memref<16x128xf32, #tpu.memory_space<vmem>>, vector<16x128xf32>
    tpu.vector_store %arg7[%c0_6, %c0_7], %7 {strides = array<i32>} : memref<16x128xf32, #tpu.memory_space<vmem>>, vector<16x128xf32>,
    %c0_i32_8 = arith.constant 0 : i32
    %9 = arith.cmpi eq, %arg1, %c0_i32_8 : i32
    %10 = arith.extui %9 : i1 to i32
    %c0_i32_9 = arith.constant 0 : i32
    %11 = arith.cmpi ne, %10, %c0_i32_9 : i32
    scf.if %11 {
      %c0_10 = arith.constant 0 : index
      %c0_11 = arith.constant 0 : index
      %12 = vector.load %arg7[%c0_10, %c0_11] : memref<16x128xf32, #tpu.memory_space<vmem>>, vector<16x128xf32>
      %cst_12 = arith.constant dense<0.000000e+00> : vector<128xf32>
      %13 = vector.multi_reduction <add>, %12, %cst_12 [0] : vector<16x128xf32> to vector<128xf32>
      %14 = vector.shape_cast %13 : vector<128xf32> to vector<1x128xf32>
      %cst_13 = arith.constant 1.600000e+01 : f32
      %15 = vector.broadcast %cst_13 : f32 to vector<1x128xf32>
      %16 = arith.divf %14, %15 : vector<1x128xf32>
      %17 = vector.broadcast %16 : vector<1x128xf32> to vector<16x128xf32>
      %18 = arith.subf %12, %17 : vector<16x128xf32>
      %19 = arith.mulf %18, %18 : vector<16x128xf32>
      %cst_14 = arith.constant dense<0.000000e+00> : vector<128xf32>
      %20 = vector.multi_reduction <add>, %19, %cst_14 [0] : vector<16x128xf32> to vector<128xf32>
      %21 = vector.shape_cast %20 : vector<128xf32> to vector<1x128xf32>
      %cst_15 = arith.constant 1.600000e+01 : f32
      %22 = vector.broadcast %cst_15 : f32 to vector<1x128xf32>
      %23 = arith.divf %21, %22 : vector<1x128xf32>
      %c0_16 = arith.constant 0 : index
      %c0_17 = arith.constant 0 : index
      %24 = vector.load %arg4[%c0_16, %c0_17] : memref<1x128xf32, #tpu.memory_space<vmem>>, vector<1x128xf32>
      %cst_18 = arith.constant 9.99999974E-6 : f32
      %25 = vector.broadcast %cst_18 : f32 to vector<1x128xf32>
      %26 = arith.addf %23, %25 : vector<1x128xf32>
      %27 = math.rsqrt %26 : vector<1x128xf32>
      %28 = arith.mulf %24, %27 : vector<1x128xf32>
      %29 = vector.broadcast %28 : vector<1x128xf32> to vector<16x128xf32>
      %30 = arith.mulf %18, %29 : vector<16x128xf32>
      %c0_19 = arith.constant 0 : index
      %c0_20 = arith.constant 0 : index
      %31 = vector.load %arg5[%c0_19, %c0_20] : memref<1x128xf32, #tpu.memory_space<vmem>>, vector<1x128xf32>
      %32 = vector.broadcast %31 : vector<1x128xf32> to vector<16x128xf32>
      %33 = arith.addf %30, %32 : vector<16x128xf32>
      %c0_21 = arith.constant 0 : index
      %c0_22 = arith.constant 0 : index
      %34 = vector.load %arg6[%c0_21, %c0_22] : memref<16x128xf32, #tpu.memory_space<vmem>>, vector<16x128xf32>
      tpu.vector_store %arg6[%c0_21, %c0_22], %33 {strides = array<i32>} : memref<16x128xf32, #tpu.memory_space<vmem>>, vector<16x128xf32>,
    } else {
    }
    return
  }
  func.func @transform_0(%arg0: i32, %arg1: i32) -> (i32, i32) {
    %c0_i32 = arith.constant 0 : i32
    %c0_i32_0 = arith.constant 0 : i32
    return %c0_i32, %arg1 : i32, i32
  }
  func.func @transform_1(%arg0: i32, %arg1: i32) -> (i32, i32) {
    %c0_i32 = arith.constant 0 : i32
    return %arg1, %arg0 : i32, i32
  }
  func.func @transform_2(%arg0: i32, %arg1: i32) -> (i32, i32) {
    %c0_i32 = arith.constant 0 : i32
    %c0_i32_0 = arith.constant 0 : i32
    return %c0_i32, %arg0 : i32, i32
  }
  func.func @transform_3(%arg0: i32, %arg1: i32) -> (i32, i32) {
    %c0_i32 = arith.constant 0 : i32
    %c0_i32_0 = arith.constant 0 : i32
    return %c0_i32, %arg0 : i32, i32
  }
  func.func @transform_4(%arg0: i32, %arg1: i32) -> (i32, i32) {
    %c0_i32 = arith.constant 0 : i32
    %c0_i32_0 = arith.constant 0 : i32
    return %c0_i32, %arg0 : i32, i32
  }
}

</mosaic_0001>

<bundles_post_ra>
// kernel: feed_forward_layer.1
= control target key start
LH: loop header
LB: loop body
LE: loop exit
PB: predicated region body
PF: predicated region fallthrough
CT: control target
= control target key end

     0   :  { %v288_v1 = vmov 0.0   ;;  %vm289_vm0 = vmmov 0   ;;  %s363_s0 = inlined_call_operand.vmem [shape: bf16[16,128], index: 0, kind: input, shape index: {}]   ;;  %s364_s1 = inlined_call_operand.vmem [shape: bf16[128,128], index: 1, kind: input, shape index: {}]   ;;  %s365_s2 = inlined_call_operand.vmem [shape: f32[1,128], index: 2, kind: input, shape index: {}]   ;;  %s366_s3 = inlined_call_operand.vmem [shape: f32[1,128], index: 3, kind: input, shape index: {}]   ;;  %s367_s4 = inlined_call_operand.hbm [shape: f32[16,128], index: 4, kind: output, shape index: {}]  }
   0x1   :  { %v253_v0 = vld [vmem:[%s364_s1] sm:$0xff]   ;;  %228 = vmatprep.subr.bf16.mxu0 %v288_v1  ;;  %v254_v2 = vld [vmem:[%s364_s1 + $0x8] sm:$0xff]   ;;  %244 = vmatprep.mubr.msk.bf16.mxu0 %vm289_vm0, %v288_v1  ;;  %v255_v3 = vld [vmem:[%s364_s1 + $0x10] sm:$0xff]  }
   0x2   :  { %229 = vmatpush3.bf16.msra.mxu0 %v253_v0 }
   0x3   :  { %230 = vmatprep.subr.bf16.mxu0 %v288_v1 }
   0x6   :  { %231 = vmatpush3.bf16.msra.mxu0 %v254_v2 }
   0x7   :  { %232 = vmatprep.subr.bf16.mxu0 %v288_v1 }
   0x8   :  { %9 = vsyncpa [#allocation4], 0  ;;  %v256_v4 = vld [vmem:[%s364_s1 + $0x18] sm:$0xff]   ;;  %v257_v5 = vld [vmem:[%s364_s1 + $0x20] sm:$0xff]   ;;  %v175_v35 = vlaneseq  ;;  %s290_s7 = smov [#allocation3]  }
   0x9   :  { %v258_v6 = vld [vmem:[%s364_s1 + $0x28] sm:$0xff]   ;;  %v259_v7 = vld [vmem:[%s364_s1 + $0x30] sm:$0xff]   ;;  %v260_v8 = vld [vmem:[%s364_s1 + $0x38] sm:$0xff]   ;;  %s198_s8 = sshll.u32 %s290_s7, 4  ;;  %s199_s8 = int_to_ptr.vmem [resolvable:$true] %s198_s8 }
   0xa   :  { %233 = vmatpush3.bf16.msra.mxu0 %v255_v3  ;;  %v261_v9 = vld [vmem:[%s363_s0] sm:$0xff]   ;;  %v176_v36 = vshrl.u32 %v175_v35, 7  ;;  %s264_s11 = scalar_lea.vmem %s199_s8, 256  ;;  %p269_p1 = scmp.lt.s32.totalorder %s199_s8, %s199_s8 }
   0xb   :  { %234 = vmatprep.subr.bf16.mxu0 %v288_v1  ;;  %v170_v37 = vld [vmem:[%s365_s2] sm:$0x1]  ;;  %p265_p0 = scmp.ne.s32.totalorder %s199_s8, %s264_s11  ;;  %p270_p2 = scmp.lt.s32.totalorder %s264_s11, %s264_s11 }
   0xc   :  { %v177_v38 = vsub.s32 0, %v176_v36  ;;  %v218_v42 = vld [vmem:[%s366_s3] ss:$0 sm:$0xff] }
   0xd   :  { %p271_p3 = por %p270_p2, %p269_p1 }
   0xe   :  { %235 = vmatpush3.bf16.msra.mxu0 %v256_v4 }
   0xf   :  { %236 = vmatprep.subr.bf16.mxu0 %v288_v1  ;;  %p272_p4 = pnand %p271_p3, %p265_p0 }
  0x12   :  { %237 = vmatpush3.bf16.msra.mxu0 %v257_v5 }
  0x13   :  { %238 = vmatprep.subr.bf16.mxu0 %v288_v1 }
  0x16   :  { %239 = vmatpush3.bf16.msra.mxu0 %v258_v6 }
  0x17   :  { %240 = vmatprep.subr.bf16.mxu0 %v288_v1 }
  0x1a   :  { %241 = vmatpush3.bf16.msra.mxu0 %v259_v7 }
  0x1b   :  { %242 = vmatprep.subr.bf16.mxu0 %v288_v1 }
  0x1e   :  { %243 = vmatpush3.bf16.msra.mxu0 %v260_v8 }
  0x21   :  { %245 = vmatmul.mubr.bf16.vlgmr.msra.gmra.mrb[0].mxu0 %v261_v9 }
  0xf4   :  { %v133_v10 = vpop.f32.mrb[0].mxu0 }
  0xf5   :  { %v246_v11 = vpop.f32.mrb[1].mxu0 }
  0xf6   :  { %v136_v12 = vpop.f32.mrb[2].mxu0 }
  0xf7   :  { %v149_v13 = vadd.f32 %v136_v12, %v133_v10  ;;  %v247_v14 = vpop.f32.mrb[3].mxu0 }
  0xf9   :  { %v150_v15 = vrot.slane %v149_v13, 4 }
  0xfb   :  { %v151_v16 = vadd.f32 %v150_v15, %v149_v13 }
  0xfd   :  { %v152_v17 = vrot.slane %v151_v16, 2 }
  0xff   :  { %v153_v18 = vadd.f32 %v152_v17, %v151_v16 }
 0x101   :  { %v154_v19 = vrot.slane %v153_v18, 1 }
 0x103   :  { %v155_v20 = vadd.f32 %v154_v19, %v153_v18 }
 0x105   :  { %v157_v21 = vmul.f32 0.0625, %v155_v20 }
 0x107   :  { %v158_v22 = vsub.f32 %v133_v10, %v157_v21  ;;  %v159_v23 = vsub.f32 %v136_v12, %v157_v21 }
 0x109   :  { %v160_v24 = vmul.f32 %v158_v22, %v158_v22  ;;  %v161_v25 = vmul.f32 %v159_v23, %v159_v23 }
 0x10b   :  { %v162_v26 = vadd.f32 %v161_v25, %v160_v24 }
 0x10d   :  { %v163_v27 = vrot.slane %v162_v26, 4 }
 0x10f   :  { %v164_v28 = vadd.f32 %v163_v27, %v162_v26 }
 0x111   :  { %v165_v29 = vrot.slane %v164_v28, 2 }
 0x113   :  { %v166_v30 = vadd.f32 %v165_v29, %v164_v28 }
 0x115   :  { %v167_v31 = vrot.slane %v166_v30, 1 }
 0x117   :  { %v168_v32 = vadd.f32 %v167_v31, %v166_v30 }
 0x119   :  { %v169_v33 = vmul.f32 0.0625, %v168_v32 }
 0x11b   :  { %v171_v34 = vadd.f32 1e-05, %v169_v33 }
 0x11d   :  { %262 = vrsqrt.f32 %v171_v34 }
 0x127   :  { %v263_v39 = vpop.eup %262 }
 0x128   :  { %v173_v40 = vmul.f32 %v263_v39, %v170_v37 }
 0x12a   :  { %v178_v41 = vrot.slane %v173_v40, %v177_v38 }
 0x12c   :  { %v180_v43 = vmul.f32 %v178_v41, %v158_v22  ;;  %v181_v44 = vmul.f32 %v178_v41, %v159_v23 }
 0x12e   :  { %v189_v45 = vadd.f32 %v218_v42, %v180_v43  ;;  %v190_v46 = vadd.f32 %v218_v42, %v181_v44 }
 0x130   :  { %191 = vst [vmem:[#allocation3] sm:$0xff] %v189_v45  ;;  %192 = vst [vmem:[#allocation3 + $0x8] sm:$0xff] %v190_v46 }
 0x131   :  { %275 = shalt.err (!%p272_p4)
}
 0x132   :  { %s276_s13 = scalar_lea.hbm %s367_s4, 256 }
 0x133   :  { %p277_p5 = scmp.ne.s32.totalorder %s367_s4, %s276_s13  ;;  %p280_p6 = scmp.lt.u32.totalorder %s276_s13, %s367_s4 }
 0x135   :  { %p282_p7 = pnand %p280_p6, %p277_p5 }
 0x137   :  { %285 = shalt.err (!%p282_p7)
}
 0x138   :  { %s291_s17 = smov 128   ;;  %s292_s18 = smov 8  }
 0x139   :  { %204 = dma.vmem_to_hbm [thread:$0]  %s199_s8, 256, %s367_s4, [#allocation4], %s291_s17, %s291_s17, %s292_s18  }
 0x13a   :  { %286 = dma.done.wait [#allocation4], 256  }
 0x13b   :  { %287 = vsyncadd [#allocation4], 4294967040 }
 0x13c   :  { %208 = vsyncpa [#allocation4], 1 }

</bundles_post_ra>
